<compile_context>
chip_gen: v7x
topology: tpu7x:2x2x1
jax: 0.10.0
libtpu: 0.0.40
codegen_flags: <defaults>
</compile_context>

<pallas_src>
import functools

import jax
import jax.numpy as jnp
from jax.experimental import pallas as pl
from jax.experimental.pallas import tpu as pltpu


def _round_up(x, m):
    return (x + m - 1) // m * m


def rnn_step_kernel(num_layers,
                    ids_ref, h_prev_ref, embed_ref,
                    w_cat_ref, b_cat_ref, w_fc_ref, b_fc_ref,
                    out_ref, h_new_ref):
    """Single-timestep multi-layer tanh RNN + final linear layer.

    Everything (embedding gather, L fused layer matmuls, fc) runs in one
    kernel: matmuls on the MXU (bf16 in / f32 accumulate), tanh on the EUP,
    bias adds on the VPU. All blocks are padded (8,128)-tiles, so every
    store is dense.
    """
    bb = ids_ref.shape[0]
    v_pad = embed_ref.shape[0]

    # Fused embedding gather: one-hot(ids) @ embed  (exact in f32).
    ids = ids_ref[...]                                          # (bb, 1) int32
    iota = jax.lax.broadcasted_iota(jnp.int32, (bb, v_pad), 1)  # (bb, V_pad)
    onehot = (iota == ids).astype(jnp.float32)
    x = jnp.dot(onehot, embed_ref[...],
                preferred_element_type=jnp.float32)             # (bb, H_pad) f32

    for l in range(num_layers):                                 # static unroll, L small
        # One MXU push per layer: [x | h_prev] @ [W_ih ; W_hh] + fused bias.
        xh = jnp.concatenate([x, h_prev_ref[l]], axis=-1)       # (bb, 2*H_pad) f32
        z = jnp.dot(xh.astype(w_cat_ref.dtype), w_cat_ref[l],
                    preferred_element_type=jnp.float32) + b_cat_ref[l]
        h = jnp.tanh(z)                                         # f32, EUP
        h_new_ref[l] = h                                        # dense (8,128)-tile store
        x = h

    out_ref[...] = (jnp.dot(x.astype(w_fc_ref.dtype), w_fc_ref[...],
                            preferred_element_type=jnp.float32)
                    + b_fc_ref[...])                            # (bb, O_pad), lane-dense


def prepare_params(params, compute_dtype=jnp.bfloat16):
    """One-time param prep: pad to (8,128) tiles, pre-stack [W_ih ; W_hh],
    pre-fold b_ih + b_hh, and cast matmul weights to bf16."""
    V, H = params["embed"].shape
    L = params["w_ih"].shape[0]
    O = params["w_fc"].shape[1]
    Vp, Hp, Op = _round_up(V, 128), _round_up(H, 128), _round_up(O, 128)

    def pad(x, shape):
        return jnp.pad(x, [(0, t - s) for s, t in zip(x.shape, shape)])

    w_ih = pad(params["w_ih"], (L, Hp, Hp))
    w_hh = pad(params["w_hh"], (L, Hp, Hp))
    return {
        "L": L, "H": H, "O": O,
        "embed": pad(params["embed"], (Vp, Hp)).astype(jnp.float32),
        "w_cat": jnp.concatenate([w_ih, w_hh], axis=1).astype(compute_dtype),
        "b_cat": pad(params["b_ih"] + params["b_hh"], (L, 1, Hp)).astype(jnp.float32),
        "w_fc": pad(params["w_fc"], (Hp, Op)).astype(compute_dtype),
        "b_fc": pad(params["b_fc"], (1, Op)).astype(jnp.float32),
    }


def rnn_forward(token_ids, hidden_prev, prepped):
    """Matches RNN.forward(x, hidden_prev): returns (logits (B,O), hidden (L,B,H))."""
    L, H, O = prepped["L"], prepped["H"], prepped["O"]
    B = token_ids.shape[0]
    Hp = prepped["embed"].shape[1]
    Op = prepped["w_fc"].shape[1]

    # Pad batch to the sublane tile; pick a batch block and (re)derive padding.
    Bp = _round_up(max(B, 8), 8)
    BB = Bp if Bp <= 128 else 128
    Bp = _round_up(Bp, BB)
    nb = Bp // BB

    ids = jnp.pad(token_ids.astype(jnp.int32), (0, Bp - B)).reshape(Bp, 1)
    h_prev = jnp.pad(hidden_prev.astype(jnp.float32),
                     [(0, 0), (0, Bp - B), (0, Hp - H)])

    out_pad, h_new_pad = pl.pallas_call(
        functools.partial(rnn_step_kernel, L),
        out_shape=(jax.ShapeDtypeStruct((Bp, Op), jnp.float32),
                   jax.ShapeDtypeStruct((L, Bp, Hp), jnp.float32)),
        grid=(nb,),
        in_specs=[
            pl.BlockSpec((BB, 1), lambda b: (b, 0)),                   # token ids
            pl.BlockSpec((L, BB, Hp), lambda b: (0, b, 0)),            # hidden_prev
            pl.BlockSpec(prepped["embed"].shape, lambda b: (0, 0)),    # embedding table
            pl.BlockSpec(prepped["w_cat"].shape, lambda b: (0, 0, 0)),  # [W_ih;W_hh]
            pl.BlockSpec(prepped["b_cat"].shape, lambda b: (0, 0, 0)),  # fused bias
            pl.BlockSpec(prepped["w_fc"].shape, lambda b: (0, 0)),      # fc weight
            pl.BlockSpec(prepped["b_fc"].shape, lambda b: (0, 0)),      # fc bias
        ],
        out_specs=(
            pl.BlockSpec((BB, Op), lambda b: (b, 0)),                  # logits
            pl.BlockSpec((L, BB, Hp), lambda b: (0, b, 0)),            # new hidden
        ),
        input_output_aliases={1: 1},   # update the hidden state in place
        compiler_params=pltpu.CompilerParams(
            dimension_semantics=("parallel",)),
    )(ids, h_prev, prepped["embed"], prepped["w_cat"], prepped["b_cat"],
      prepped["w_fc"], prepped["b_fc"])

    return out_pad[:B, :O], h_new_pad[:, :B, :H]


def rnn_forward_ref(token_ids, hidden_prev, params):
    """Pure-JAX f32 reference (mirrors torch semantics) for correctness check."""
    x = params["embed"][token_ids]
    h_new = []
    for l in range(hidden_prev.shape[0]):
        z = (x @ params["w_ih"][l] + params["b_ih"][l]
             + hidden_prev[l] @ params["w_hh"][l] + params["b_hh"][l])
        x = jnp.tanh(z)
        h_new.append(x)
    out = x @ params["w_fc"] + params["b_fc"]
    return out, jnp.stack(h_new, axis=0)


if __name__ == "__main__":
    vocab_size, hidden_size, num_layers, output_size = 16, 32, 2, 10
    batch = 2

    key = jax.random.PRNGKey(0)
    ks = jax.random.split(key, 8)
    s = float(1.0 / hidden_size ** 0.5)  # PyTorch default uniform init scale

    params = {
        "embed": jax.random.normal(ks[0], (vocab_size, hidden_size), jnp.float32),
        "w_ih":  jax.random.uniform(ks[1], (num_layers, hidden_size, hidden_size),
                                    jnp.float32, -s, s),
        "w_hh":  jax.random.uniform(ks[2], (num_layers, hidden_size, hidden_size),
                                    jnp.float32, -s, s),
        "b_ih":  jax.random.uniform(ks[3], (num_layers, 1, hidden_size),
                                    jnp.float32, -s, s),
        "b_hh":  jax.random.uniform(ks[4], (num_layers, 1, hidden_size),
                                    jnp.float32, -s, s),
        "w_fc":  jax.random.uniform(ks[5], (hidden_size, output_size),
                                    jnp.float32, -s, s),
        "b_fc":  jax.random.uniform(ks[6], (1, output_size), jnp.float32, -s, s),
    }

    token_ids = jax.random.randint(ks[7], (batch,), 0, vocab_size)          # x
    hidden_prev = jnp.zeros((num_layers, batch, hidden_size), jnp.float32)  # init_hidden

    prepped = prepare_params(params)
    out, hidden = rnn_forward(token_ids, hidden_prev, prepped)
    jax.block_until_ready((out, hidden))

    out_ref, hidden_ref = rnn_forward_ref(token_ids, hidden_prev, params)
    assert out.shape == (batch, output_size)
    assert hidden.shape == (num_layers, batch, hidden_size)
    # bf16 weights on the MXU path (f32 accumulate / f32 tanh) -> relaxed tol.
    assert jnp.allclose(out, out_ref, atol=5e-2), \
        float(jnp.max(jnp.abs(out - out_ref)))
    assert jnp.allclose(hidden, hidden_ref, atol=5e-2), \
        float(jnp.max(jnp.abs(hidden - hidden_ref)))

    print("KERNEL_OK")
</pallas_src>

<mosaic_0001>
module attributes {stable_mosaic.version = 11 : i64} {
  func.func @rnn_step_kernel(%arg0: i32, %arg1: memref<8x1xi32, #tpu.memory_space<vmem>>, %arg2: memref<2x8x128xf32, #tpu.memory_space<vmem>>, %arg3: memref<128x128xf32, #tpu.memory_space<vmem>>, %arg4: memref<2x256x128xbf16, #tpu.memory_space<vmem>>, %arg5: memref<2x1x128xf32, #tpu.memory_space<vmem>>, %arg6: memref<128x128xbf16, #tpu.memory_space<vmem>>, %arg7: memref<1x128xf32, #tpu.memory_space<vmem>>, %arg8: memref<8x128xf32, #tpu.memory_space<vmem>>, %arg9: memref<2x8x128xf32, #tpu.memory_space<vmem>>) attributes {dimension_semantics = [#tpu.dimension_semantics<parallel>], iteration_bounds = array<i64: 1>, scalar_prefetch = 0 : i64, scratch_operands = 0 : i64, tpu.core_type = #tpu.core_type<tc>, window_params = [{transform_indices = @transform_0, window_bounds = array<i64: 8, 1>}, {transform_indices = @transform_1, window_bounds = array<i64: 2, 8, 128>}, {pipeline_mode = #tpu.pipeline_mode<synchronous>, transform_indices = @transform_2, window_bounds = array<i64: 128, 128>}, {pipeline_mode = #tpu.pipeline_mode<synchronous>, transform_indices = @transform_3, window_bounds = array<i64: 2, 256, 128>}, {pipeline_mode = #tpu.pipeline_mode<synchronous>, transform_indices = @transform_4, window_bounds = array<i64: 2, 1, 128>}, {pipeline_mode = #tpu.pipeline_mode<synchronous>, transform_indices = @transform_5, window_bounds = array<i64: 128, 128>}, {pipeline_mode = #tpu.pipeline_mode<synchronous>, transform_indices = @transform_6, window_bounds = array<i64: 1, 128>}, {transform_indices = @transform_7, window_bounds = array<i64: 8, 128>}, {transform_indices = @transform_8, window_bounds = array<i64: 2, 8, 128>}]} {
    %c0 = arith.constant 0 : index
    %c0_0 = arith.constant 0 : index
    %0 = vector.load %arg1[%c0, %c0_0] : memref<8x1xi32, #tpu.memory_space<vmem>>, vector<8x1xi32>
    %1 = tpu.iota {dimensions = array<i32: 1>} : vector<8x128xi32>
    %2 = vector.broadcast %0 : vector<8x1xi32> to vector<8x128xi32>
    %3 = arith.cmpi eq, %1, %2 : vector<8x128xi32>
    %4 = arith.extui %3 : vector<8x128xi1> to vector<8x128xi32>
    %5 = arith.sitofp %4 : vector<8x128xi32> to vector<8x128xf32>
    %c0_1 = arith.constant 0 : index
    %c0_2 = arith.constant 0 : index
    %6 = vector.load %arg3[%c0_1, %c0_2] : memref<128x128xf32, #tpu.memory_space<vmem>>, vector<128x128xf32>
    %cst = arith.constant dense<0.000000e+00> : vector<8x128xf32>
    %7 = tpu.matmul %5, %6, %cst {dimension_numbers = #tpu.dot_dimension_numbers<[1], [0], [0], [1], [0, 0, 1, 1], [], []>} : vector<8x128xf32>, vector<128x128xf32>, vector<8x128xf32> -> vector<8x128xf32>
    %c0_3 = arith.constant 0 : index
    %c0_4 = arith.constant 0 : index
    %c0_5 = arith.constant 0 : index
    %8 = vector.load %arg2[%c0_3, %c0_4, %c0_5] : memref<2x8x128xf32, #tpu.memory_space<vmem>>, vector<1x8x128xf32>
    %9 = vector.shape_cast %8 : vector<1x8x128xf32> to vector<8x128xf32>
    %10 = tpu.concatenate %7, %9 in 1 : vector<8x128xf32>, vector<8x128xf32> -> vector<8x256xf32>
    %11 = arith.truncf %10 : vector<8x256xf32> to vector<8x256xbf16>
    %c0_6 = arith.constant 0 : index
    %c0_7 = arith.constant 0 : index
    %c0_8 = arith.constant 0 : index
    %12 = vector.load %arg4[%c0_6, %c0_7, %c0_8] : memref<2x256x128xbf16, #tpu.memory_space<vmem>>, vector<1x256x128xbf16>
    %13 = vector.shape_cast %12 : vector<1x256x128xbf16> to vector<256x128xbf16>
    %cst_9 = arith.constant dense<0.000000e+00> : vector<8x128xf32>
    %14 = tpu.matmul %11, %13, %cst_9 {dimension_numbers = #tpu.dot_dimension_numbers<[1], [0], [0], [1], [0, 0, 1, 1], [], []>} : vector<8x256xbf16>, vector<256x128xbf16>, vector<8x128xf32> -> vector<8x128xf32>
    %c0_10 = arith.constant 0 : index
    %c0_11 = arith.constant 0 : index
    %c0_12 = arith.constant 0 : index
    %15 = vector.load %arg5[%c0_10, %c0_11, %c0_12] : memref<2x1x128xf32, #tpu.memory_space<vmem>>, vector<1x1x128xf32>
    %16 = vector.shape_cast %15 : vector<1x1x128xf32> to vector<1x128xf32>
    %17 = vector.broadcast %16 : vector<1x128xf32> to vector<8x128xf32>
    %18 = arith.addf %14, %17 : vector<8x128xf32>
    %19 = math.tanh %18 : vector<8x128xf32>
    %c0_13 = arith.constant 0 : index
    %c0_14 = arith.constant 0 : index
    %c0_15 = arith.constant 0 : index
    %20 = vector.load %arg9[%c0_13, %c0_14, %c0_15] : memref<2x8x128xf32, #tpu.memory_space<vmem>>, vector<1x8x128xf32>
    %21 = vector.shape_cast %20 : vector<1x8x128xf32> to vector<8x128xf32>
    %22 = vector.shape_cast %19 : vector<8x128xf32> to vector<1x8x128xf32>
    tpu.vector_store %arg9[%c0_13, %c0_14, %c0_15], %22 {strides = array<i32>} : memref<2x8x128xf32, #tpu.memory_space<vmem>>, vector<1x8x128xf32>,
    %c1 = arith.constant 1 : index
    %c0_16 = arith.constant 0 : index
    %c0_17 = arith.constant 0 : index
    %23 = vector.load %arg2[%c1, %c0_16, %c0_17] : memref<2x8x128xf32, #tpu.memory_space<vmem>>, vector<1x8x128xf32>
    %24 = vector.shape_cast %23 : vector<1x8x128xf32> to vector<8x128xf32>
    %25 = tpu.concatenate %19, %24 in 1 : vector<8x128xf32>, vector<8x128xf32> -> vector<8x256xf32>
    %26 = arith.truncf %25 : vector<8x256xf32> to vector<8x256xbf16>
    %c1_18 = arith.constant 1 : index
    %c0_19 = arith.constant 0 : index
    %c0_20 = arith.constant 0 : index
    %27 = vector.load %arg4[%c1_18, %c0_19, %c0_20] : memref<2x256x128xbf16, #tpu.memory_space<vmem>>, vector<1x256x128xbf16>
    %28 = vector.shape_cast %27 : vector<1x256x128xbf16> to vector<256x128xbf16>
    %cst_21 = arith.constant dense<0.000000e+00> : vector<8x128xf32>
    %29 = tpu.matmul %26, %28, %cst_21 {dimension_numbers = #tpu.dot_dimension_numbers<[1], [0], [0], [1], [0, 0, 1, 1], [], []>} : vector<8x256xbf16>, vector<256x128xbf16>, vector<8x128xf32> -> vector<8x128xf32>
    %c1_22 = arith.constant 1 : index
    %c0_23 = arith.constant 0 : index
    %c0_24 = arith.constant 0 : index
    %30 = vector.load %arg5[%c1_22, %c0_23, %c0_24] : memref<2x1x128xf32, #tpu.memory_space<vmem>>, vector<1x1x128xf32>
    %31 = vector.shape_cast %30 : vector<1x1x128xf32> to vector<1x128xf32>
    %32 = vector.broadcast %31 : vector<1x128xf32> to vector<8x128xf32>
    %33 = arith.addf %29, %32 : vector<8x128xf32>
    %34 = math.tanh %33 : vector<8x128xf32>
    %c1_25 = arith.constant 1 : index
    %c0_26 = arith.constant 0 : index
    %c0_27 = arith.constant 0 : index
    %35 = vector.load %arg9[%c1_25, %c0_26, %c0_27] : memref<2x8x128xf32, #tpu.memory_space<vmem>>, vector<1x8x128xf32>
    %36 = vector.shape_cast %35 : vector<1x8x128xf32> to vector<8x128xf32>
    %37 = vector.shape_cast %34 : vector<8x128xf32> to vector<1x8x128xf32>
    tpu.vector_store %arg9[%c1_25, %c0_26, %c0_27], %37 {strides = array<i32>} : memref<2x8x128xf32, #tpu.memory_space<vmem>>, vector<1x8x128xf32>,
    %38 = arith.truncf %34 : vector<8x128xf32> to vector<8x128xbf16>
    %c0_28 = arith.constant 0 : index
    %c0_29 = arith.constant 0 : index
    %39 = vector.load %arg6[%c0_28, %c0_29] : memref<128x128xbf16, #tpu.memory_space<vmem>>, vector<128x128xbf16>
    %cst_30 = arith.constant dense<0.000000e+00> : vector<8x128xf32>
    %40 = tpu.matmul %38, %39, %cst_30 {dimension_numbers = #tpu.dot_dimension_numbers<[1], [0], [0], [1], [0, 0, 1, 1], [], []>} : vector<8x128xbf16>, vector<128x128xbf16>, vector<8x128xf32> -> vector<8x128xf32>
    %c0_31 = arith.constant 0 : index
    %c0_32 = arith.constant 0 : index
    %41 = vector.load %arg7[%c0_31, %c0_32] : memref<1x128xf32, #tpu.memory_space<vmem>>, vector<1x128xf32>
    %42 = vector.broadcast %41 : vector<1x128xf32> to vector<8x128xf32>
    %43 = arith.addf %40, %42 : vector<8x128xf32>
    %c0_33 = arith.constant 0 : index
    %c0_34 = arith.constant 0 : index
    %44 = vector.load %arg8[%c0_33, %c0_34] : memref<8x128xf32, #tpu.memory_space<vmem>>, vector<8x128xf32>
    tpu.vector_store %arg8[%c0_33, %c0_34], %43 {strides = array<i32>} : memref<8x128xf32, #tpu.memory_space<vmem>>, vector<8x128xf32>,
    return
  }
  func.func @transform_0(%arg0: i32) -> (i32, i32) {
    %c0_i32 = arith.constant 0 : i32
    %c0_i32_0 = arith.constant 0 : i32
    return %arg0, %c0_i32 : i32, i32
  }
  func.func @transform_1(%arg0: i32) -> (i32, i32, i32) {
    %c0_i32 = arith.constant 0 : i32
    %c0_i32_0 = arith.constant 0 : i32
    %c0_i32_1 = arith.constant 0 : i32
    return %c0_i32, %arg0, %c0_i32_0 : i32, i32, i32
  }
  func.func @transform_2(%arg0: i32) -> (i32, i32) {
    %c0_i32 = arith.constant 0 : i32
    %c0_i32_0 = arith.constant 0 : i32
    %c0_i32_1 = arith.constant 0 : i32
    return %c0_i32, %c0_i32_0 : i32, i32
  }
  func.func @transform_3(%arg0: i32) -> (i32, i32, i32) {
    %c0_i32 = arith.constant 0 : i32
    %c0_i32_0 = arith.constant 0 : i32
    %c0_i32_1 = arith.constant 0 : i32
    %c0_i32_2 = arith.constant 0 : i32
    return %c0_i32, %c0_i32_0, %c0_i32_1 : i32, i32, i32
  }
  func.func @transform_4(%arg0: i32) -> (i32, i32, i32) {
    %c0_i32 = arith.constant 0 : i32
    %c0_i32_0 = arith.constant 0 : i32
    %c0_i32_1 = arith.constant 0 : i32
    %c0_i32_2 = arith.constant 0 : i32
    return %c0_i32, %c0_i32_0, %c0_i32_1 : i32, i32, i32
  }
  func.func @transform_5(%arg0: i32) -> (i32, i32) {
    %c0_i32 = arith.constant 0 : i32
    %c0_i32_0 = arith.constant 0 : i32
    %c0_i32_1 = arith.constant 0 : i32
    return %c0_i32, %c0_i32_0 : i32, i32
  }
  func.func @transform_6(%arg0: i32) -> (i32, i32) {
    %c0_i32 = arith.constant 0 : i32
    %c0_i32_0 = arith.constant 0 : i32
    %c0_i32_1 = arith.constant 0 : i32
    return %c0_i32, %c0_i32_0 : i32, i32
  }
  func.func @transform_7(%arg0: i32) -> (i32, i32) {
    %c0_i32 = arith.constant 0 : i32
    %c0_i32_0 = arith.constant 0 : i32
    return %arg0, %c0_i32 : i32, i32
  }
  func.func @transform_8(%arg0: i32) -> (i32, i32, i32) {
    %c0_i32 = arith.constant 0 : i32
    %c0_i32_0 = arith.constant 0 : i32
    %c0_i32_1 = arith.constant 0 : i32
    return %c0_i32, %arg0, %c0_i32_0 : i32, i32, i32
  }
}

</mosaic_0001>

<bundles_post_ra>
// kernel: tpu_custom_call.1
= control target key start
LH: loop header
LB: loop body
LE: loop exit
PB: predicated region body
PF: predicated region fallthrough
CT: control target
= control target key end

     0   :  { %14 = vsyncpa [#allocation3], 0  ;;  %s1268_s0 = inlined_call_operand.vmem [shape: s32[8,1], index: 0, kind: input, shape index: {}]   ;;  %s1269_s1 = inlined_call_operand.hbm [shape: f32[2,8,128], index: 1, kind: input, shape index: {}, may-alias: {1,8}]   ;;  %s1270_s2 = inlined_call_operand.hbm [shape: f32[128,128], index: 2, kind: input, shape index: {}]   ;;  %s1271_s3 = inlined_call_operand.hbm [shape: bf16[2,256,128], index: 3, kind: input, shape index: {}]   ;;  %s1272_s4 = inlined_call_operand.vmem [shape: f32[2,1,128], index: 4, kind: input, shape index: {}]   ;;  %s1273_s5 = inlined_call_operand.hbm [shape: bf16[128,128], index: 5, kind: input, shape index: {}]   ;;  %s1274_s6 = inlined_call_operand.vmem [shape: f32[1,128], index: 6, kind: input, shape index: {}]   ;;  %s1275_s7 = inlined_call_operand.hbm [shape: f32[8,128], index: 7, kind: output, shape index: {0}]   ;;  %s1276_s8 = inlined_call_operand.hbm [shape: f32[2,8,128], index: 8, kind: output, shape index: {1}, may-alias: {1,8}]  }
   0x1   :  { %15 = vsyncpa [#allocation6], 0 }
   0x2   :  { %16 = vsyncpa [#allocation9], 0 }
   0x3   :  { %17 = vsyncpa [#allocation4], 0 }
   0x4   :  { %18 = vsyncpa [#allocation12], 0  ;;  %s1088_s27 = smov [#allocation5]   ;;  %s1089_s29 = smov [#allocation2]  }
   0x5   :  { %s38_s28 = sshll.u32 %s1088_s27, 4  ;;  %s26_s30 = sshll.u32 %s1089_s29, 4  ;;  %s39_s28 = int_to_ptr.vmem [resolvable:$true] %s38_s28  ;;  %s1148_s30 = int_to_ptr.vmem [resolvable:$true] %s26_s30 }
   0x6   :  { %s946_s11 = scalar_lea.hbm %s1270_s2, 2048 }
   0x7   :  { %p947_p0 = scmp.ne.s32.totalorder %s1270_s2, %s946_s11  ;;  %p950_p1 = scmp.lt.u32.totalorder %s946_s11, %s1270_s2 }
   0x9   :  { %p952_p2 = pnand %p950_p1, %p947_p0 }
   0xb   :  { %955 = shalt.err (!%p952_p2)
}
   0xc   :  { %s956_s16 = scalar_lea.vmem %s39_s28, 2048  ;;  %p961_p4 = scmp.lt.s32.totalorder %s39_s28, %s39_s28 }
   0xd   :  { %p957_p3 = scmp.ne.s32.totalorder %s39_s28, %s956_s16  ;;  %p962_p5 = scmp.lt.s32.totalorder %s956_s16, %s956_s16 }
   0xf   :  { %p963_p6 = por %p962_p5, %p961_p4 }
  0x11   :  { %p964_p7 = pnand %p963_p6, %p957_p3 }
  0x13   :  { %967 = shalt.err (!%p964_p7)
}
  0x14   :  { %s1090_s17 = smov 128   ;;  %s1091_s18 = smov 8  }
  0x15   :  { %44 = dma.hbm_to_vmem [thread:$0]  %s1270_s2, 2048, %s39_s28, [#allocation6], %s1090_s17, %s1090_s17, %s1091_s18  }
  0x16   :  { %s968_s23 = scalar_lea.hbm %s1269_s1, 256 }
  0x17   :  { %p969_p8 = scmp.ne.s32.totalorder %s1269_s1, %s968_s23  ;;  %p972_p9 = scmp.lt.u32.totalorder %s968_s23, %s1269_s1 }
  0x19   :  { %p974_p10 = pnand %p972_p9, %p969_p8 }
  0x1b   :  { %977 = shalt.err (!%p974_p10)
}
  0x1c   :  { %s978_s29 = scalar_lea.vmem %s1148_s30, 256  ;;  %p983_p12 = scmp.lt.s32.totalorder %s1148_s30, %s1148_s30 }
  0x1d   :  { %p979_p11 = scmp.ne.s32.totalorder %s1148_s30, %s978_s29  ;;  %p984_p13 = scmp.lt.s32.totalorder %s978_s29, %s978_s29 }
  0x1f   :  { %p985_p0 = por %p984_p13, %p983_p12 }
  0x21   :  { %p986_p1 = pnand %p985_p0, %p979_p11 }
  0x23   :  { %989 = shalt.err (!%p986_p1)
}
  0x24   :  { %32 = dma.hbm_to_vmem [thread:$0]  %s1269_s1, 256, %s1148_s30, [#allocation3], %s1090_s17, %s1090_s17, %s1091_s18  }
  0x25   :  { %s1092_s9 = smov [#allocation7]   ;;  %s990_s13 = scalar_lea.hbm %s1271_s3, 4096 }
  0x26   :  { %s50_s10 = sshll.u32 %s1092_s9, 4  ;;  %p991_p2 = scmp.ne.s32.totalorder %s1271_s3, %s990_s13  ;;  %s51_s10 = int_to_ptr.vmem [resolvable:$true] %s50_s10 }
  0x27   :  { %p994_p3 = scmp.lt.u32.totalorder %s990_s13, %s1271_s3 }
  0x29   :  { %p996_p4 = pnand %p994_p3, %p991_p2 }
  0x2b   :  { %999 = shalt.err (!%p996_p4)
}
  0x2c   :  { %s1000_s20 = scalar_lea.vmem %s51_s10, 4096  ;;  %p1005_p6 = scmp.lt.s32.totalorder %s51_s10, %s51_s10 }
  0x2d   :  { %p1001_p5 = scmp.ne.s32.totalorder %s51_s10, %s1000_s20  ;;  %p1006_p7 = scmp.lt.s32.totalorder %s1000_s20, %s1000_s20 }
  0x2f   :  { %p1007_p8 = por %p1006_p7, %p1005_p6 }
  0x31   :  { %p1008_p9 = pnand %p1007_p8, %p1001_p5 }
  0x33   :  { %1011 = shalt.err (!%p1008_p9)
}
  0x34   :  { %s1093_s1 = smov 64   ;;  %s1094_s30 = smov 4  }
  0x35   :  { %56 = dma.hbm_to_vmem [thread:$0]  %s1271_s3, 4096, %s51_s10, [#allocation6], %s1093_s1, %s1093_s1, %s1094_s30  }
  0x36   :  { %s1095_s23 = smov [#allocation8]   ;;  %s1012_s27 = scalar_lea.hbm %s1273_s5, 1024 }
  0x37   :  { %s64_s24 = sshll.u32 %s1095_s23, 4  ;;  %p1013_p10 = scmp.ne.s32.totalorder %s1273_s5, %s1012_s27  ;;  %s65_s24 = int_to_ptr.vmem [resolvable:$true] %s64_s24 }
  0x38   :  { %p1016_p11 = scmp.lt.u32.totalorder %s1012_s27, %s1273_s5 }
  0x3a   :  { %p1018_p12 = pnand %p1016_p11, %p1013_p10 }
  0x3c   :  { %1021 = shalt.err (!%p1018_p12)
}
  0x3d   :  { %s1022_s11 = scalar_lea.vmem %s65_s24, 1024  ;;  %p1027_p0 = scmp.lt.s32.totalorder %s65_s24, %s65_s24 }
  0x3e   :  { %p1023_p13 = scmp.ne.s32.totalorder %s65_s24, %s1022_s11  ;;  %p1028_p1 = scmp.lt.s32.totalorder %s1022_s11, %s1022_s11 }
  0x40   :  { %p1029_p2 = por %p1028_p1, %p1027_p0 }
  0x42   :  { %p1030_p3 = pnand %p1029_p2, %p1023_p13 }
  0x44   :  { %1033 = shalt.err (!%p1030_p3)
}
  0x45   :  { %70 = dma.hbm_to_vmem [thread:$0]  %s1273_s5, 1024, %s65_s24, [#allocation9], %s1093_s1, %s1093_s1, %s1094_s30  }
  0x46   :  { %1078 = dma.done.wait [#allocation3], 256  }
  0x47   :  { %1079 = vsyncadd [#allocation3], 4294967040 }
  0x48   :  { %1080 = dma.done.wait [#allocation6], 6144  }
  0x49   :  { %1081 = vsyncadd [#allocation6], 4294961152 }
  0x4a   :  { %1082 = dma.done.wait [#allocation9], 1024  }
  0x4b   :  { %1083 = vsyncadd [#allocation9], 4294966272  ;;  %v1096_v0 = vmov 0   ;;  %v1097_v1 = vmov 0.0|0.0   ;;  %v86_v2 = vld [vmem:[%s1268_s0] sm:$0xff]  ;;  %v95_v3 = vld [vmem:[#allocation5] sm:$0xff]  ;;  %v87_v43 = vlaneseq }
  0x4c   :  { %901 = vset.pattern.permute.xlu0 %v1096_v0  ;;  %862 = vmatprep.subr.bf16.mxu0 %v1097_v1  ;;  %v96_v4 = vld [vmem:[#allocation5 + $0x8] sm:$0xff]  ;;  %v97_v6 = vld [vmem:[#allocation5 + $0x10] sm:$0xff]  ;;  %v98_v7 = vld [vmem:[#allocation5 + $0x18] sm:$0xff]  ;;  %vm1098_vm0 = vmmov 0   ;;  %v1099_v8 = vmov 0.0   ;;  %v1100_v46 = vmov 1.0  }
  0x4d   :  { %90 = vperm.xlu0 %901, %v86_v2   ;;  %v863_v5 = vpack.c.bf16 %v96_v4, %v95_v3  ;;  %839 = vmatprep.mubr.msk.f32.mxu0 %vm1098_vm0, %v1099_v8  ;;  %v866_v9 = vpack.c.bf16 %v98_v7, %v97_v6  ;;  %v99_v10 = vld [vmem:[#allocation5 + $0x20] sm:$0xff]  ;;  %v100_v11 = vld [vmem:[#allocation5 + $0x28] sm:$0xff]  ;;  %v101_v12 = vld [vmem:[#allocation5 + $0x30] sm:$0xff]  ;;  %v88_v44 = vand.u32 127, %v87_v43  ;;  %s1101_s16 = smov [#allocation11]  }
  0x4e   :  { %v102_v13 = vld [vmem:[#allocation5 + $0x38] sm:$0xff]  ;;  %v902_v14 = vld [vmem:[#allocation7 + $0x40] sm:$0xff]   ;;  %v869_v15 = vpack.c.bf16 %v100_v11, %v99_v10  ;;  %v904_v17 = vld [vmem:[#allocation7 + $0x48] sm:$0xff]   ;;  %s673_s19 = sshll.u32 %s1101_s16, 4  ;;  %s674_s19 = int_to_ptr.vmem [resolvable:$true] %s673_s19 }
  0x4f   :  { %864 = vmatpush3.bf16.msra.mxu0 %v863_v5  ;;  %v903_v16 = vld [vmem:[#allocation7] sm:$0xff]   ;;  %754 = vmatprep.subr.bf16.mxu1 %v902_v14  ;;  %v905_v18 = vld [vmem:[#allocation7 + $0x8] sm:$0xff]   ;;  %v906_v19 = vld [vmem:[#allocation7 + $0x50] sm:$0xff]   ;;  %v872_v20 = vpack.c.bf16 %v102_v13, %v101_v12  ;;  %s1034_s20 = scalar_lea.vmem %s674_s19, 256  ;;  %p1039_p5 = scmp.lt.s32.totalorder %s674_s19, %s674_s19 }
  0x50   :  { %865 = vmatprep.subr.bf16.mxu0 %v1097_v1  ;;  %755 = vmatpush3.bf16.msra.mxu1 %v903_v16  ;;  %v103_v21 = vld [vmem:[#allocation5 + $0x40] sm:$0xff]  ;;  %v104_v22 = vld [vmem:[#allocation5 + $0x48] sm:$0xff]  ;;  %v907_v23 = vld [vmem:[#allocation7 + $0x10] sm:$0xff]   ;;  %p1035_p4 = scmp.ne.s32.totalorder %s674_s19, %s1034_s20  ;;  %p1040_p6 = scmp.lt.s32.totalorder %s1034_s20, %s1034_s20 }
  0x51   :  { %756 = vmatprep.subr.bf16.mxu1 %v904_v17  ;;  %v908_v24 = vld [vmem:[#allocation7 + $0x58] sm:$0xff]   ;;  %v875_v25 = vpack.c.bf16 %v104_v22, %v103_v21  ;;  %v105_v26 = vld [vmem:[#allocation5 + $0x50] sm:$0xff]  ;;  %v107_v29 = vld [vmem:[#allocation5 + $0x60] sm:$0xff] }
  0x52   :  { %v106_v27 = vld [vmem:[#allocation5 + $0x58] sm:$0xff]  ;;  %v108_v30 = vld [vmem:[#allocation5 + $0x68] sm:$0xff]  ;;  %v910_v31 = vld [vmem:[#allocation7 + $0x60] sm:$0xff]   ;;  %p1041_p7 = por %p1040_p6, %p1039_p5 }
  0x53   :  { %867 = vmatpush3.bf16.msra.mxu0 %v866_v9  ;;  %v909_v28 = vld [vmem:[#allocation7 + $0x18] sm:$0xff]   ;;  %v878_v32 = vpack.c.bf16 %v106_v27, %v105_v26  ;;  %v911_v33 = vld [vmem:[#allocation7 + $0x20] sm:$0xff]   ;;  %v912_v34 = vld [vmem:[#allocation7 + $0x68] sm:$0xff]   ;;  %v881_v37 = vpack.c.bf16 %v108_v30, %v107_v29 }
  0x54   :  { %868 = vmatprep.subr.bf16.mxu0 %v1097_v1  ;;  %757 = vmatpush3.bf16.msra.mxu1 %v905_v18  ;;  %v109_v35 = vld [vmem:[#allocation5 + $0x70] sm:$0xff]  ;;  %v110_v36 = vld [vmem:[#allocation5 + $0x78] sm:$0xff]  ;;  %v913_v38 = vld [vmem:[#allocation7 + $0x28] sm:$0xff]   ;;  %p1042_p8 = pnand %p1041_p7, %p1035_p4 }
  0x55   :  { %758 = vmatprep.subr.bf16.mxu1 %v906_v19  ;;  %v914_v39 = vld [vmem:[#allocation7 + $0x70] sm:$0xff]   ;;  %v884_v40 = vpack.c.bf16 %v110_v36, %v109_v35  ;;  %v916_v42 = vld [vmem:[#allocation7 + $0x78] sm:$0xff]   ;;  %v918_v50 = vld [vmem:[#allocation7 + $0xc0] sm:$0xff]  }
  0x56   :  { %v915_v41 = vld [vmem:[#allocation7 + $0x30] sm:$0xff]   ;;  %v917_v47 = vld [vmem:[#allocation7 + $0x38] sm:$0xff]   ;;  %v919_v51 = vld [vmem:[#allocation7 + $0x80] sm:$0xff]  }
  0x57   :  { %870 = vmatpush3.bf16.msra.mxu0 %v869_v15  ;;  %v181_v48 = vld [vmem:[#allocation2] sm:$0xff]  ;;  %v920_v52 = vld [vmem:[#allocation7 + $0xc8] sm:$0xff]   ;;  %v924_v56 = vld [vmem:[#allocation7 + $0xd8] sm:$0xff]  }
  0x58   :  { %871 = vmatprep.subr.bf16.mxu0 %v1097_v1  ;;  %759 = vmatpush3.bf16.msra.mxu1 %v907_v23  ;;  %v183_v49 = vpack.c.bf16 %v181_v48, %v181_v48  ;;  %v921_v53 = vld [vmem:[#allocation7 + $0x88] sm:$0xff]   ;;  %v922_v54 = vld [vmem:[#allocation7 + $0xd0] sm:$0xff]   ;;  %v925_v60 = vld [vmem:[#allocation7 + $0x98] sm:$0xff]  }
  0x59   :  { %760 = vmatprep.subr.bf16.mxu1 %v908_v24  ;;  %v923_v55 = vld [vmem:[#allocation7 + $0x90] sm:$0xff]   ;;  %v926_v61 = vld [vmem:[#allocation7 + $0xe0] sm:$0xff]   ;;  %v928_v63 = vld [vmem:[#allocation7 + $0xe8] sm:$0xff]  }
  0x5a   :  { %351 = vmatprep.mubr.bf16.mxu1 %v183_v49  ;;  %v927_v62 = vld [vmem:[#allocation7 + $0xa0] sm:$0xff]   ;;  %v929_v0 = vld [vmem:[#allocation7 + $0xa8] sm:$0xff]   ;;  %v931_v2 = vld [vmem:[#allocation7 + $0xb0] sm:$0xff]  }
  0x5b   :  { %873 = vmatpush3.bf16.msra.mxu0 %v872_v20  ;;  %v932_v3 = vld [vmem:[#allocation7 + $0xf8] sm:$0xff]   ;;  %v934_v7 = vld [vmem:[#allocation8] sm:$0xff]   ;;  %v935_v9 = vld [vmem:[#allocation8 + $0x8] sm:$0xff]  }
  0x5c   :  { %874 = vmatprep.subr.bf16.mxu0 %v1097_v1  ;;  %761 = vmatpush3.bf16.msra.mxu1 %v909_v28  ;;  %v933_v4 = vld [vmem:[#allocation7 + $0xb8] sm:$0xff]   ;;  %v936_v10 = vld [vmem:[#allocation8 + $0x10] sm:$0xff]   ;;  %v938_v21 = vld [vmem:[#allocation8 + $0x20] sm:$0xff]  }
  0x5d   :  { %762 = vmatprep.subr.bf16.mxu1 %v910_v31  ;;  %v362_v5 = vld [vmem:[#allocation2 + $0x8] sm:$0xff]  ;;  %v693_v12 = vld [vmem:[%s1272_s4] ss:$0 sm:$0xff]  ;;  %v939_v22 = vld [vmem:[#allocation8 + $0x28] sm:$0xff]  }
  0x5e   :  { %v364_v6 = vpack.c.bf16 %v362_v5, %v362_v5  ;;  %v937_v20 = vld [vmem:[#allocation8 + $0x18] sm:$0xff]   ;;  %v940_v23 = vld [vmem:[#allocation8 + $0x30] sm:$0xff]  }
  0x5f   :  { %876 = vmatpush3.bf16.msra.mxu0 %v875_v25  ;;  %v941_v24 = vld [vmem:[#allocation8 + $0x38] sm:$0xff]   ;;  %v711_v26 = vld [vmem:[%s1272_s4 + $0x1] ss:$0 sm:$0xff] }
  0x60   :  { %877 = vmatprep.subr.bf16.mxu0 %v1097_v1  ;;  %763 = vmatpush3.bf16.msra.mxu1 %v911_v33 }
  0x61   :  { %764 = vmatprep.subr.bf16.mxu1 %v912_v34 }
  0x63   :  { %879 = vmatpush3.bf16.msra.mxu0 %v878_v32 }
  0x64   :  { %880 = vmatprep.subr.bf16.mxu0 %v1097_v1  ;;  %765 = vmatpush3.bf16.msra.mxu1 %v913_v38 }
  0x65   :  { %766 = vmatprep.subr.bf16.mxu1 %v914_v39 }
  0x67   :  { %882 = vmatpush3.bf16.msra.mxu0 %v881_v37 }
  0x68   :  { %883 = vmatprep.subr.bf16.mxu0 %v1097_v1  ;;  %767 = vmatpush3.bf16.msra.mxu1 %v915_v41  ;;  %v930_v1 = vld [vmem:[#allocation7 + $0xf0] sm:$0xff]  }
  0x69   :  { %768 = vmatprep.subr.bf16.mxu1 %v916_v42 }
  0x6b   :  { %885 = vmatpush3.bf16.msra.mxu0 %v884_v40 }
  0x6c   :  { %769 = vmatpush3.bf16.msra.mxu1 %v917_v47  ;;  %776 = vmatprep.subr.bf16.mxu0 %v918_v50 }
  0x6d   :  { %842 = vmatprep.subr.bf16.mxu1 %v1099_v8 }
  0xcc   :  { %v91_v45 = vpop.permute.xlu0 %90 }
  0xcd   :  { %vm92_vm1 = vcmp.eq.s32.totalorder %v88_v44, %v91_v45 }
  0xce   :  { %840 = vmatmul.mubr.msk.f32.vlgmr.msra.gmra.mrb[0].mxu0 %vm92_vm1, %v1100_v46 }
  0xcf   :  { %777 = vmatpush3.bf16.msra.mxu0 %v919_v51  ;;  %534 = vmatprep.mubr.bf16.mxu0 %v364_v6 }
  0xd0   :  { %778 = vmatprep.subr.bf16.mxu0 %v920_v52 }
  0xd3   :  { %779 = vmatpush3.bf16.msra.mxu0 %v921_v53 }
  0xd4   :  { %780 = vmatprep.subr.bf16.mxu0 %v922_v54 }
  0xd7   :  { %781 = vmatpush3.bf16.msra.mxu0 %v923_v55 }
  0xd8   :  { %782 = vmatprep.subr.bf16.mxu0 %v924_v56 }
  0xdb   :  { %783 = vmatpush3.bf16.msra.mxu0 %v925_v60 }
  0xdc   :  { %784 = vmatprep.subr.bf16.mxu0 %v926_v61 }
  0xdf   :  { %785 = vmatpush3.bf16.msra.mxu0 %v927_v62 }
  0xe0   :  { %786 = vmatprep.subr.bf16.mxu0 %v928_v63 }
  0xe3   :  { %787 = vmatpush3.bf16.msra.mxu0 %v929_v0 }
  0xe4   :  { %788 = vmatprep.subr.bf16.mxu0 %v930_v1 }
  0xe7   :  { %789 = vmatpush3.bf16.msra.mxu0 %v931_v2 }
  0xe8   :  { %790 = vmatprep.subr.bf16.mxu0 %v932_v3 }
  0xeb   :  { %791 = vmatpush3.bf16.msra.mxu0 %v933_v4 }
 0x1a1   :  { %v177_v57 = vpop.f32.mrb[0].mxu0 }
 0x1a2   :  { %v182_v58 = vpack.c.bf16 %v177_v57, %v177_v57  ;;  %v841_v59 = vpop.f32.mrb[1].mxu0 }
 0x1a4   :  { %352 = vmatmul.mubr.bf16.vlgmr.msra.gmra.mrb[0].mxu1 %v182_v58 }
 0x1a5   :  { %858 = vmatprep.mubr.msk.bf16.mxu1 %vm1098_vm0, %v1099_v8  ;;  %843 = vmatpush3.bf16.msra.mxu1 %v934_v7 }
 0x1a6   :  { %844 = vmatprep.subr.bf16.mxu1 %v1099_v8 }
 0x1a9   :  { %845 = vmatpush3.bf16.msra.mxu1 %v935_v9 }
 0x1aa   :  { %846 = vmatprep.subr.bf16.mxu1 %v1099_v8 }
 0x1ad   :  { %847 = vmatpush3.bf16.msra.mxu1 %v936_v10 }
 0x1ae   :  { %848 = vmatprep.subr.bf16.mxu1 %v1099_v8 }
 0x1b1   :  { %849 = vmatpush3.bf16.msra.mxu1 %v937_v20 }
 0x1b2   :  { %850 = vmatprep.subr.bf16.mxu1 %v1099_v8 }
 0x1b5   :  { %851 = vmatpush3.bf16.msra.mxu1 %v938_v21 }
 0x1b6   :  { %852 = vmatprep.subr.bf16.mxu1 %v1099_v8 }
 0x1b9   :  { %853 = vmatpush3.bf16.msra.mxu1 %v939_v22 }
 0x1ba   :  { %854 = vmatprep.subr.bf16.mxu1 %v1099_v8 }
 0x1bd   :  { %855 = vmatpush3.bf16.msra.mxu1 %v940_v23 }
 0x1be   :  { %856 = vmatprep.subr.bf16.mxu1 %v1099_v8 }
 0x1c1   :  { %857 = vmatpush3.bf16.msra.mxu1 %v941_v24 }
 0x277   :  { %v770_v11 = vpop.f32.mrb[0].mxu1 }
 0x278   :  { %v771_v13 = vpop.f32.mrb[1].mxu1 }
 0x279   :  { %v772_v14 = vadd.f32 %v771_v13, %v770_v11  ;;  %v773_v15 = vpop.f32.mrb[2].mxu1 }
 0x27a   :  { %v774_v16 = vpop.f32.mrb[3].mxu1 }
 0x27b   :  { %v354_v17 = vadd.f32 %v772_v14, %v693_v12 }
 0x27d   :  { %942 = vtanh.f32 %v354_v17 }
 0x287   :  { %v943_v18 = vpop.eup %942 }
 0x288   :  { %360 = vst [vmem:[#allocation11] sm:$0xff] %v943_v18  ;;  %v363_v19 = vpack.c.bf16 %v943_v18, %v943_v18 }
 0x28a   :  { %535 = vmatmul.mubr.bf16.vlgmr.msra.gmra.mrb[4].mxu0 %v363_v19 }
 0x35d   :  { %v792_v25 = vpop.f32.mrb[4].mxu0 }
 0x35e   :  { %v793_v27 = vpop.f32.mrb[5].mxu0 }
 0x35f   :  { %v794_v28 = vadd.f32 %v793_v27, %v792_v25  ;;  %v795_v29 = vpop.f32.mrb[6].mxu0 }
 0x360   :  { %v796_v30 = vpop.f32.mrb[7].mxu0 }
 0x361   :  { %v537_v31 = vadd.f32 %v794_v28, %v711_v26 }
 0x363   :  { %944 = vtanh.f32 %v537_v31 }
 0x36d   :  { %v945_v32 = vpop.eup %944 }
 0x36e   :  { %544 = vst [vmem:[#allocation11 + $0x8] sm:$0xff] %v945_v32  ;;  %v545_v33 = vpack.c.bf16 %v945_v32, %v945_v32 }
 0x370   :  { %859 = vmatmul.mubr.bf16.vlgmr.msra.gmra.mrb[4].mxu1 %v545_v33 }
 0x371   :  { %1045 = shalt.err (!%p1042_p8)
}
 0x372   :  { %s1046_s30 = scalar_lea.hbm %s1276_s8, 256 }
 0x373   :  { %p1047_p9 = scmp.ne.s32.totalorder %s1276_s8, %s1046_s30  ;;  %p1050_p10 = scmp.lt.u32.totalorder %s1046_s30, %s1276_s8 }
 0x375   :  { %p1052_p11 = pnand %p1050_p10, %p1047_p9 }
 0x377   :  { %1055 = shalt.err (!%p1052_p11)
}
 0x378   :  { %679 = dma.vmem_to_hbm [thread:$0]  %s674_s19, 256, %s1276_s8, [#allocation12], %s1090_s17, %s1090_s17, %s1091_s18  }
 0x379   :  { %v728_v8 = vld [vmem:[%s1274_s6] ss:$0 sm:$0xff]  ;;  %s1102_s2 = smov [#allocation10]  }
 0x37a   :  { %s664_s28 = sshll.u32 %s1102_s2, 4  ;;  %s665_s28 = int_to_ptr.vmem [resolvable:$true] %s664_s28 }
 0x37b   :  { %s1056_s9 = scalar_lea.vmem %s665_s28, 128  ;;  %p1061_p13 = scmp.lt.s32.totalorder %s665_s28, %s665_s28 }
 0x37c   :  { %p1057_p12 = scmp.ne.s32.totalorder %s665_s28, %s1056_s9  ;;  %p1062_p0 = scmp.lt.s32.totalorder %s1056_s9, %s1056_s9 }
 0x37e   :  { %p1063_p1 = por %p1062_p0, %p1061_p13 }
 0x380   :  { %p1064_p2 = pnand %p1063_p1, %p1057_p12 }
 0x443   :  { %v651_v34 = vpop.f32.mrb[4].mxu1 }
 0x444   :  { %v652_v35 = vadd.f32 %v728_v8, %v651_v34  ;;  %v860_v36 = vpop.f32.mrb[5].mxu1 }
 0x445   :  { %v654_v37 = vpop.f32.mrb[6].mxu1 }
 0x446   :  { %657 = vst [vmem:[#allocation10] sm:$0xff] %v652_v35  ;;  %v861_v38 = vpop.f32.mrb[7].mxu1 }
 0x447   :  { %1067 = shalt.err (!%p1064_p2)
}
 0x448   :  { %s1068_s6 = scalar_lea.hbm %s1275_s7, 128 }
 0x449   :  { %p1069_p3 = scmp.ne.s32.totalorder %s1275_s7, %s1068_s6  ;;  %p1072_p4 = scmp.lt.u32.totalorder %s1068_s6, %s1275_s7 }
 0x44b   :  { %p1074_p5 = pnand %p1072_p4, %p1069_p3 }
 0x44d   :  { %1077 = shalt.err (!%p1074_p5)
}
 0x44e   :  { %667 = dma.vmem_to_hbm [thread:$0]  %s665_s28, 128, %s1275_s7, [#allocation4]  }
 0x44f   :  { %1084 = dma.done.wait [#allocation4], 128  }
 0x450   :  { %1085 = vsyncadd [#allocation4], 4294967168 }
 0x451   :  { %1086 = dma.done.wait [#allocation12], 256  }
 0x452   :  { %1087 = vsyncadd [#allocation12], 4294967040 }
 0x453   :  { %686 = vsyncpa [#allocation3], 1 }
 0x454   :  { %687 = vsyncpa [#allocation6], 1 }
 0x455   :  { %688 = vsyncpa [#allocation9], 1 }
 0x456   :  { %689 = vsyncpa [#allocation4], 1 }
 0x457   :  { %690 = vsyncpa [#allocation12], 1 }

</bundles_post_ra>
